<compile_context>
chip_gen: v5e
topology: v5e:2x2
jax: 0.10.0
libtpu: 0.0.40
codegen_flags: <defaults>
</compile_context>

<pallas_src>
import math
import functools

import jax
import jax.numpy as jnp
from jax.experimental import pallas as pl
from jax.experimental.pallas import tpu as pltpu


# ----------------------------- Pallas kernel -----------------------------

def _mha_kernel(x_ref, wqkv_ref, bqkv_ref, woh_ref, bo_ref, o_ref,
                *, num_heads, head_dim, block_b):
    # x_ref:    (Bt, S, Din)   block of batch elements (f32)
    # wqkv_ref: (Din, 3E)      bf16, columns pre-permuted to [Q | K | V] slabs,
    #                          heads contiguous, 1/sqrt(hd) folded into Q cols
    # bqkv_ref: (1, 3E)        f32, same permutation / scaling
    # woh_ref:  (H, hd, E)     bf16, W_o^T split per head
    # bo_ref:   (1, E)         f32
    # o_ref:    (Bt, S, E)     f32
    H, hd = num_heads, head_dim
    E = H * hd
    Bt = block_b
    S = x_ref.shape[1]
    Din = x_ref.shape[2]
    G = Bt * H

    # ---- fused QKV projection: one lane-dense MXU matmul over Bt*S rows ----
    x2 = x_ref[...].reshape(Bt * S, Din).astype(jnp.bfloat16)            # (Bt*S, Din)
    qkv = jnp.dot(x2, wqkv_ref[...], preferred_element_type=jnp.float32)  # (Bt*S, 3E) f32
    qkv = qkv + bqkv_ref[...]                                             # broadcast (1, 3E)

    # contiguous Q / K / V slabs (thanks to host-side column permutation)
    q2 = qkv[:, 0 * E:1 * E].reshape(Bt, S, E)
    k2 = qkv[:, 1 * E:2 * E].reshape(Bt, S, E)
    v2 = qkv[:, 2 * E:3 * E].reshape(Bt, S, E)

    def to_heads(t):
        # (Bt, S, E) -> (Bt*H, S, hd): head-batched layout for batched einsums.
        parts = [t[:, :, h * hd:(h + 1) * hd] for h in range(H)]           # static slab slices
        return jnp.stack(parts, axis=1).reshape(G, S, hd)                  # g = b*H + h

    q = to_heads(q2).astype(jnp.bfloat16)   # scale already folded into Q weights
    k = to_heads(k2).astype(jnp.bfloat16)
    v = to_heads(v2).astype(jnp.bfloat16)

    # ---- scaled-dot-product attention, batched over all (batch, head) pairs ----
    # q.k^T via dot_general contracting the hd axis of both (no transpose materialized).
    logits = jnp.einsum('gqd,gkd->gqk', q, k,
                        preferred_element_type=jnp.float32)                # (G, S, S) f32
    m = jnp.max(logits, axis=-1, keepdims=True)
    p = jnp.exp(logits - m)
    denom = jnp.sum(p, axis=-1, keepdims=True)
    attn = p * pl.reciprocal(denom, approx=True)                           # EUP divide
    values = jnp.einsum('gqk,gkd->gqd', attn.astype(jnp.bfloat16), v,
                        preferred_element_type=jnp.float32)                # (G, S, hd)

    # ---- output projection: head-batched partials, summed over heads ----
    # (identical to concat(heads) @ W_o^T, but with no in-kernel concat/relayout)
    wo_g = jnp.broadcast_to(woh_ref[...][None], (Bt, H, hd, E)).reshape(G, hd, E)
    partials = jnp.einsum('gqd,gde->gqe', values.astype(jnp.bfloat16), wo_g,
                          preferred_element_type=jnp.float32)              # (G, S, E)
    out = jnp.sum(partials.reshape(Bt, H, S, E), axis=1)                   # (Bt, S, E)
    out = out + bo_ref[...]                                                # broadcast (1, E)

    o_ref[...] = out.astype(o_ref.dtype)


# ------------------------------- wrapper ----------------------------------

def multihead_attention(x, w_qkv, b_qkv, w_o, b_o, *, num_heads, block_b=None):
    """Forward pass of the PyTorch MultiheadAttention module (mask=None).

    x:     (B, S, Din) f32
    w_qkv: (3E, Din)   torch qkv_proj.weight layout
    b_qkv: (3E,)       torch qkv_proj.bias
    w_o:   (E, E)      torch o_proj.weight layout
    b_o:   (E,)        torch o_proj.bias
    """
    B, S, Din = x.shape
    threeE = w_qkv.shape[0]
    E = threeE // 3
    H = num_heads
    hd = E // H
    assert E % H == 0

    if block_b is None:
        block_b = next(bb for bb in range(min(B, 8), 0, -1) if B % bb == 0)
    assert B % block_b == 0

    # --- host-side layout plumbing (free) ---
    # torch output feature r = h*3*hd + c, with c<hd -> Q, hd<=c<2hd -> K, else V.
    # Permute rows to [Q(head0..H-1) | K(head0..H-1) | V(head0..H-1)].
    perm = jnp.array([h * 3 * hd + p * hd + f
                      for p in range(3) for h in range(H) for f in range(hd)],
                     dtype=jnp.int32)
    w_perm = w_qkv[perm]                       # (3E, Din)
    b_perm = b_qkv[perm]                       # (3E,)
    # Fold the 1/sqrt(hd) attention scale into the Q columns (and Q bias).
    scale = 1.0 / math.sqrt(hd)
    w_perm = w_perm.at[:E].multiply(scale)
    b_perm = b_perm.at[:E].multiply(scale)

    wqkv_t = w_perm.T.astype(jnp.bfloat16)                 # (Din, 3E) bf16 MXU operand
    bqkv = b_perm.reshape(1, 3 * E).astype(jnp.float32)    # (1, 3E)
    # W_o^T split per head: wo_heads[h, f, :] == W_o^T[h*hd+f, :]
    wo_heads = w_o.T.reshape(H, hd, E).astype(jnp.bfloat16)  # (H, hd, E)
    bo = b_o.reshape(1, E).astype(jnp.float32)               # (1, E)

    kernel = functools.partial(_mha_kernel, num_heads=H, head_dim=hd, block_b=block_b)

    return pl.pallas_call(
        kernel,
        out_shape=jax.ShapeDtypeStruct((B, S, E), jnp.float32),
        grid_spec=pltpu.PrefetchScalarGridSpec(
            num_scalar_prefetch=0,
            grid=(B // block_b,),
            in_specs=[
                pl.BlockSpec((block_b, S, Din), lambda b: (b, 0, 0)),
                pl.BlockSpec((Din, 3 * E), lambda b: (0, 0)),       # resident weights
                pl.BlockSpec((1, 3 * E), lambda b: (0, 0)),
                pl.BlockSpec((H, hd, E), lambda b: (0, 0, 0)),
                pl.BlockSpec((1, E), lambda b: (0, 0)),
            ],
            out_specs=pl.BlockSpec((block_b, S, E), lambda b: (b, 0, 0)),
        ),
        compiler_params=pltpu.CompilerParams(
            dimension_semantics=("parallel",)),
    )(x, wqkv_t, bqkv, wo_heads, bo)


# --------------------------- parameter helpers ----------------------------

def xavier_uniform(key, shape):
    """nn.init.xavier_uniform_ for a torch Linear weight of shape (out, in)."""
    fan_out, fan_in = shape
    bound = math.sqrt(6.0 / (fan_in + fan_out))
    return jax.random.uniform(key, shape, jnp.float32, -bound, bound)


def mha_reference(x, w_qkv, b_qkv, w_o, b_o, num_heads):
    """Pure-JAX f32 reference mirroring the PyTorch forward (mask=None)."""
    B, S, Din = x.shape
    E = w_o.shape[0]
    hd = E // num_heads
    qkv = x @ w_qkv.T + b_qkv                              # (B, S, 3E)
    qkv = qkv.reshape(B, S, num_heads, 3 * hd).transpose(0, 2, 1, 3)
    q, k, v = qkv[..., :hd], qkv[..., hd:2 * hd], qkv[..., 2 * hd:]
    logits = jnp.einsum('bhqd,bhkd->bhqk', q, k) / math.sqrt(hd)
    attn = jax.nn.softmax(logits, axis=-1)
    vals = jnp.einsum('bhqk,bhkd->bhqd', attn, v)           # (B, H, S, hd)
    vals = vals.transpose(0, 2, 1, 3).reshape(B, S, E)
    return vals @ w_o.T + b_o


# ---------------------------------- main ----------------------------------

if __name__ == "__main__":
    B, S = 2, 8
    input_dim = 32
    embed_dim = 32
    num_heads = 4

    key = jax.random.PRNGKey(0)
    kx, kqkv, ko = jax.random.split(key, 3)

    w_qkv = xavier_uniform(kqkv, (3 * embed_dim, input_dim))   # torch Linear weight (out, in)
    b_qkv = jnp.zeros((3 * embed_dim,), jnp.float32)
    w_o = xavier_uniform(ko, (embed_dim, embed_dim))
    b_o = jnp.zeros((embed_dim,), jnp.float32)

    x = jax.random.normal(kx, (B, S, input_dim), jnp.float32)

    out = multihead_attention(x, w_qkv, b_qkv, w_o, b_o, num_heads=num_heads)
    out = jax.block_until_ready(out)

    ref = mha_reference(x, w_qkv, b_qkv, w_o, b_o, num_heads)
    assert out.shape == (B, S, embed_dim)
    # bf16 MXU operands + f32 accumulation -> compare at a bf16-appropriate tolerance
    assert jnp.allclose(out, ref, atol=3e-2, rtol=3e-2), (
        f"mismatch vs reference (max abs err {jnp.max(jnp.abs(out - ref))})")

    print("KERNEL_OK")
</pallas_src>

<mosaic_0001>
module attributes {stable_mosaic.version = 11 : i64} {
  func.func @_mha_kernel(%arg0: i32, %arg1: memref<2x8x32xf32, #tpu.memory_space<vmem>>, %arg2: memref<32x96xbf16, #tpu.memory_space<vmem>>, %arg3: memref<1x96xf32, #tpu.memory_space<vmem>>, %arg4: memref<4x8x32xbf16, #tpu.memory_space<vmem>>, %arg5: memref<1x32xf32, #tpu.memory_space<vmem>>, %arg6: memref<2x8x32xf32, #tpu.memory_space<vmem>>) attributes {dimension_semantics = [#tpu.dimension_semantics<parallel>], iteration_bounds = array<i64: 1>, scalar_prefetch = 0 : i64, scratch_operands = 0 : i64, tpu.core_type = #tpu.core_type<tc>, window_params = [{transform_indices = @transform_0, window_bounds = array<i64: 2, 8, 32>}, {pipeline_mode = #tpu.pipeline_mode<synchronous>, transform_indices = @transform_1, window_bounds = array<i64: 32, 96>}, {pipeline_mode = #tpu.pipeline_mode<synchronous>, transform_indices = @transform_2, window_bounds = array<i64: 1, 96>}, {pipeline_mode = #tpu.pipeline_mode<synchronous>, transform_indices = @transform_3, window_bounds = array<i64: 4, 8, 32>}, {pipeline_mode = #tpu.pipeline_mode<synchronous>, transform_indices = @transform_4, window_bounds = array<i64: 1, 32>}, {transform_indices = @transform_5, window_bounds = array<i64: 2, 8, 32>}]} {
    %c0 = arith.constant 0 : index
    %c0_0 = arith.constant 0 : index
    %c0_1 = arith.constant 0 : index
    %0 = vector.load %arg1[%c0, %c0_0, %c0_1] : memref<2x8x32xf32, #tpu.memory_space<vmem>>, vector<2x8x32xf32>
    %1 = vector.shape_cast %0 : vector<2x8x32xf32> to vector<16x32xf32>
    %2 = arith.truncf %1 : vector<16x32xf32> to vector<16x32xbf16>
    %c0_2 = arith.constant 0 : index
    %c0_3 = arith.constant 0 : index
    %3 = vector.load %arg2[%c0_2, %c0_3] : memref<32x96xbf16, #tpu.memory_space<vmem>>, vector<32x96xbf16>
    %cst = arith.constant dense<0.000000e+00> : vector<16x96xf32>
    %4 = tpu.matmul %2, %3, %cst {dimension_numbers = #tpu.dot_dimension_numbers<[1], [0], [0], [1], [0, 0, 1, 1], [], []>} : vector<16x32xbf16>, vector<32x96xbf16>, vector<16x96xf32> -> vector<16x96xf32>
    %c0_4 = arith.constant 0 : index
    %c0_5 = arith.constant 0 : index
    %5 = vector.load %arg3[%c0_4, %c0_5] : memref<1x96xf32, #tpu.memory_space<vmem>>, vector<1x96xf32>
    %6 = vector.broadcast %5 : vector<1x96xf32> to vector<16x96xf32>
    %7 = arith.addf %4, %6 : vector<16x96xf32>
    %8 = vector.extract_strided_slice %7 {offsets = [0, 0], sizes = [16, 32], strides = [1, 1]} : vector<16x96xf32> to vector<16x32xf32>
    %9 = vector.shape_cast %8 : vector<16x32xf32> to vector<2x8x32xf32>
    %10 = vector.extract_strided_slice %7 {offsets = [0, 32], sizes = [16, 32], strides = [1, 1]} : vector<16x96xf32> to vector<16x32xf32>
    %11 = vector.shape_cast %10 : vector<16x32xf32> to vector<2x8x32xf32>
    %12 = vector.extract_strided_slice %7 {offsets = [0, 64], sizes = [16, 32], strides = [1, 1]} : vector<16x96xf32> to vector<16x32xf32>
    %13 = vector.shape_cast %12 : vector<16x32xf32> to vector<2x8x32xf32>
    %14 = vector.extract_strided_slice %9 {offsets = [0, 0, 0], sizes = [2, 8, 8], strides = [1, 1, 1]} : vector<2x8x32xf32> to vector<2x8x8xf32>
    %15 = vector.extract_strided_slice %9 {offsets = [0, 0, 8], sizes = [2, 8, 8], strides = [1, 1, 1]} : vector<2x8x32xf32> to vector<2x8x8xf32>
    %16 = vector.extract_strided_slice %9 {offsets = [0, 0, 16], sizes = [2, 8, 8], strides = [1, 1, 1]} : vector<2x8x32xf32> to vector<2x8x8xf32>
    %17 = vector.extract_strided_slice %9 {offsets = [0, 0, 24], sizes = [2, 8, 8], strides = [1, 1, 1]} : vector<2x8x32xf32> to vector<2x8x8xf32>
    %18 = vector.shape_cast %14 : vector<2x8x8xf32> to vector<2x1x8x8xf32>
    %19 = vector.shape_cast %15 : vector<2x8x8xf32> to vector<2x1x8x8xf32>
    %20 = vector.shape_cast %16 : vector<2x8x8xf32> to vector<2x1x8x8xf32>
    %21 = vector.shape_cast %17 : vector<2x8x8xf32> to vector<2x1x8x8xf32>
    %22 = tpu.concatenate %18, %19, %20, %21 in 1 : vector<2x1x8x8xf32>, vector<2x1x8x8xf32>, vector<2x1x8x8xf32>, vector<2x1x8x8xf32> -> vector<2x4x8x8xf32>
    %23 = vector.shape_cast %22 : vector<2x4x8x8xf32> to vector<8x8x8xf32>
    %24 = arith.truncf %23 : vector<8x8x8xf32> to vector<8x8x8xbf16>
    %25 = vector.extract_strided_slice %11 {offsets = [0, 0, 0], sizes = [2, 8, 8], strides = [1, 1, 1]} : vector<2x8x32xf32> to vector<2x8x8xf32>
    %26 = vector.extract_strided_slice %11 {offsets = [0, 0, 8], sizes = [2, 8, 8], strides = [1, 1, 1]} : vector<2x8x32xf32> to vector<2x8x8xf32>
    %27 = vector.extract_strided_slice %11 {offsets = [0, 0, 16], sizes = [2, 8, 8], strides = [1, 1, 1]} : vector<2x8x32xf32> to vector<2x8x8xf32>
    %28 = vector.extract_strided_slice %11 {offsets = [0, 0, 24], sizes = [2, 8, 8], strides = [1, 1, 1]} : vector<2x8x32xf32> to vector<2x8x8xf32>
    %29 = vector.shape_cast %25 : vector<2x8x8xf32> to vector<2x1x8x8xf32>
    %30 = vector.shape_cast %26 : vector<2x8x8xf32> to vector<2x1x8x8xf32>
    %31 = vector.shape_cast %27 : vector<2x8x8xf32> to vector<2x1x8x8xf32>
    %32 = vector.shape_cast %28 : vector<2x8x8xf32> to vector<2x1x8x8xf32>
    %33 = tpu.concatenate %29, %30, %31, %32 in 1 : vector<2x1x8x8xf32>, vector<2x1x8x8xf32>, vector<2x1x8x8xf32>, vector<2x1x8x8xf32> -> vector<2x4x8x8xf32>
    %34 = vector.shape_cast %33 : vector<2x4x8x8xf32> to vector<8x8x8xf32>
    %35 = arith.truncf %34 : vector<8x8x8xf32> to vector<8x8x8xbf16>
    %36 = vector.extract_strided_slice %13 {offsets = [0, 0, 0], sizes = [2, 8, 8], strides = [1, 1, 1]} : vector<2x8x32xf32> to vector<2x8x8xf32>
    %37 = vector.extract_strided_slice %13 {offsets = [0, 0, 8], sizes = [2, 8, 8], strides = [1, 1, 1]} : vector<2x8x32xf32> to vector<2x8x8xf32>
    %38 = vector.extract_strided_slice %13 {offsets = [0, 0, 16], sizes = [2, 8, 8], strides = [1, 1, 1]} : vector<2x8x32xf32> to vector<2x8x8xf32>
    %39 = vector.extract_strided_slice %13 {offsets = [0, 0, 24], sizes = [2, 8, 8], strides = [1, 1, 1]} : vector<2x8x32xf32> to vector<2x8x8xf32>
    %40 = vector.shape_cast %36 : vector<2x8x8xf32> to vector<2x1x8x8xf32>
    %41 = vector.shape_cast %37 : vector<2x8x8xf32> to vector<2x1x8x8xf32>
    %42 = vector.shape_cast %38 : vector<2x8x8xf32> to vector<2x1x8x8xf32>
    %43 = vector.shape_cast %39 : vector<2x8x8xf32> to vector<2x1x8x8xf32>
    %44 = tpu.concatenate %40, %41, %42, %43 in 1 : vector<2x1x8x8xf32>, vector<2x1x8x8xf32>, vector<2x1x8x8xf32>, vector<2x1x8x8xf32> -> vector<2x4x8x8xf32>
    %45 = vector.shape_cast %44 : vector<2x4x8x8xf32> to vector<8x8x8xf32>
    %46 = arith.truncf %45 : vector<8x8x8xf32> to vector<8x8x8xbf16>
    "tpu.trace_start"() <{level = 10 : i32, message = "gqd,gkd->gqk"}> : () -> ()
    %cst_6 = arith.constant dense<0.000000e+00> : vector<8x8x8xf32>
    %47 = tpu.matmul %24, %35, %cst_6 {dimension_numbers = #tpu.dot_dimension_numbers<[2], [2], [1], [1], [0, 0, 0, 1, 1, 1], [0], [0]>} : vector<8x8x8xbf16>, vector<8x8x8xbf16>, vector<8x8x8xf32> -> vector<8x8x8xf32>
    "tpu.trace_stop"() : () -> ()
    %cst_7 = arith.constant dense<0xFF800000> : vector<8x8xf32>
    %48 = vector.multi_reduction <maximumf>, %47, %cst_7 [2] : vector<8x8x8xf32> to vector<8x8xf32>
    %49 = vector.shape_cast %48 : vector<8x8xf32> to vector<8x8x1xf32>
    %50 = vector.broadcast %49 : vector<8x8x1xf32> to vector<8x8x8xf32>
    %51 = arith.subf %47, %50 : vector<8x8x8xf32>
    %52 = math.exp %51 : vector<8x8x8xf32>
    %cst_8 = arith.constant dense<0.000000e+00> : vector<8x8xf32>
    %53 = vector.multi_reduction <add>, %52, %cst_8 [2] : vector<8x8x8xf32> to vector<8x8xf32>
    %54 = vector.shape_cast %53 : vector<8x8xf32> to vector<8x8x1xf32>
    %55 = tpu.reciprocal %54 {approx = true} : vector<8x8x1xf32> -> vector<8x8x1xf32>
    %56 = vector.broadcast %55 : vector<8x8x1xf32> to vector<8x8x8xf32>
    %57 = arith.mulf %52, %56 : vector<8x8x8xf32>
    %58 = arith.truncf %57 : vector<8x8x8xf32> to vector<8x8x8xbf16>
    "tpu.trace_start"() <{level = 10 : i32, message = "gqk,gkd->gqd"}> : () -> ()
    %cst_9 = arith.constant dense<0.000000e+00> : vector<8x8x8xf32>
    %59 = tpu.matmul %58, %46, %cst_9 {dimension_numbers = #tpu.dot_dimension_numbers<[2], [1], [1], [2], [0, 0, 0, 1, 1, 2], [0], [0]>} : vector<8x8x8xbf16>, vector<8x8x8xbf16>, vector<8x8x8xf32> -> vector<8x8x8xf32>
    "tpu.trace_stop"() : () -> ()
    %c0_10 = arith.constant 0 : index
    %c0_11 = arith.constant 0 : index
    %c0_12 = arith.constant 0 : index
    %60 = vector.load %arg4[%c0_10, %c0_11, %c0_12] : memref<4x8x32xbf16, #tpu.memory_space<vmem>>, vector<4x8x32xbf16>
    %61 = vector.shape_cast %60 : vector<4x8x32xbf16> to vector<1x4x8x32xbf16>
    %62 = vector.shape_cast %61 : vector<1x4x8x32xbf16> to vector<1x4x8x32xbf16>
    %63 = vector.broadcast %62 : vector<1x4x8x32xbf16> to vector<2x4x8x32xbf16>
    %64 = vector.shape_cast %63 : vector<2x4x8x32xbf16> to vector<8x8x32xbf16>
    %65 = arith.truncf %59 : vector<8x8x8xf32> to vector<8x8x8xbf16>
    "tpu.trace_start"() <{level = 10 : i32, message = "gqd,gde->gqe"}> : () -> ()
    %cst_13 = arith.constant dense<0.000000e+00> : vector<8x8x32xf32>
    %66 = tpu.matmul %65, %64, %cst_13 {dimension_numbers = #tpu.dot_dimension_numbers<[2], [1], [1], [2], [0, 0, 0, 1, 1, 2], [0], [0]>} : vector<8x8x8xbf16>, vector<8x8x32xbf16>, vector<8x8x32xf32> -> vector<8x8x32xf32>
    "tpu.trace_stop"() : () -> ()
    %67 = vector.shape_cast %66 : vector<8x8x32xf32> to vector<2x4x8x32xf32>
    %cst_14 = arith.constant dense<0.000000e+00> : vector<2x8x32xf32>
    %68 = vector.multi_reduction <add>, %67, %cst_14 [1] : vector<2x4x8x32xf32> to vector<2x8x32xf32>
    %c0_15 = arith.constant 0 : index
    %c0_16 = arith.constant 0 : index
    %69 = vector.load %arg5[%c0_15, %c0_16] : memref<1x32xf32, #tpu.memory_space<vmem>>, vector<1x32xf32>
    %70 = vector.shape_cast %69 : vector<1x32xf32> to vector<1x1x32xf32>
    %71 = vector.broadcast %70 : vector<1x1x32xf32> to vector<2x8x32xf32>
    %72 = arith.addf %68, %71 : vector<2x8x32xf32>
    %c0_17 = arith.constant 0 : index
    %c0_18 = arith.constant 0 : index
    %c0_19 = arith.constant 0 : index
    %73 = vector.load %arg6[%c0_17, %c0_18, %c0_19] : memref<2x8x32xf32, #tpu.memory_space<vmem>>, vector<2x8x32xf32>
    tpu.vector_store %arg6[%c0_17, %c0_18, %c0_19], %72 {strides = array<i32>} : memref<2x8x32xf32, #tpu.memory_space<vmem>>, vector<2x8x32xf32>,
    return
  }
  func.func @transform_0(%arg0: i32) -> (i32, i32, i32) {
    %c0_i32 = arith.constant 0 : i32
    %c0_i32_0 = arith.constant 0 : i32
    %c0_i32_1 = arith.constant 0 : i32
    return %arg0, %c0_i32, %c0_i32_0 : i32, i32, i32
  }
  func.func @transform_1(%arg0: i32) -> (i32, i32) {
    %c0_i32 = arith.constant 0 : i32
    %c0_i32_0 = arith.constant 0 : i32
    %c0_i32_1 = arith.constant 0 : i32
    return %c0_i32, %c0_i32_0 : i32, i32
  }
  func.func @transform_2(%arg0: i32) -> (i32, i32) {
    %c0_i32 = arith.constant 0 : i32
    %c0_i32_0 = arith.constant 0 : i32
    %c0_i32_1 = arith.constant 0 : i32
    return %c0_i32, %c0_i32_0 : i32, i32
  }
  func.func @transform_3(%arg0: i32) -> (i32, i32, i32) {
    %c0_i32 = arith.constant 0 : i32
    %c0_i32_0 = arith.constant 0 : i32
    %c0_i32_1 = arith.constant 0 : i32
    %c0_i32_2 = arith.constant 0 : i32
    return %c0_i32, %c0_i32_0, %c0_i32_1 : i32, i32, i32
  }
  func.func @transform_4(%arg0: i32) -> (i32, i32) {
    %c0_i32 = arith.constant 0 : i32
    %c0_i32_0 = arith.constant 0 : i32
    %c0_i32_1 = arith.constant 0 : i32
    return %c0_i32, %c0_i32_0 : i32, i32
  }
  func.func @transform_5(%arg0: i32) -> (i32, i32, i32) {
    %c0_i32 = arith.constant 0 : i32
    %c0_i32_0 = arith.constant 0 : i32
    %c0_i32_1 = arith.constant 0 : i32
    return %arg0, %c0_i32, %c0_i32_0 : i32, i32, i32
  }
}

</mosaic_0001>

<bundles_post_ra>
// kernel: tpu_custom_call.1
= control target key start
LH: loop header
LB: loop body
LE: loop exit
PB: predicated region body
PF: predicated region fallthrough
CT: control target
= control target key end

     0   :  { %10 = vsyncpa [#allocation3], 0  ;;  %s1170_s0 = inlined_call_operand.hbm [shape: f32[2,8,32], index: 0, kind: input, shape index: {}]   ;;  %s1171_s1 = inlined_call_operand.hbm [shape: bf16[32,96], index: 1, kind: input, shape index: {}]   ;;  %s1172_s2 = inlined_call_operand.vmem [shape: f32[1,96], index: 2, kind: input, shape index: {}]   ;;  %s1173_s3 = inlined_call_operand.hbm [shape: bf16[4,8,32], index: 3, kind: input, shape index: {}]   ;;  %s1174_s4 = inlined_call_operand.vmem [shape: f32[1,32], index: 4, kind: input, shape index: {}]   ;;  %s1175_s5 = inlined_call_operand.hbm [shape: f32[2,8,32], index: 5, kind: output, shape index: {}]  }
   0x1   :  { %11 = vsyncpa [#allocation6], 0  ;;  %s30_s20 = sshll.u32 %s1171_s1, 4  ;;  %s31_s20 = int_to_ptr.hbm [resolvable:$true] %s30_s20 }
   0x2   :  { %12 = vsyncpa [#allocation4], 0  ;;  %s973_s21 = smov [#allocation5]   ;;  %s17_s25 = sshll.u32 %s1170_s0, 4  ;;  %s18_s25 = int_to_ptr.hbm [resolvable:$true] %s17_s25 }
   0x3   :  { %s32_s22 = sshll.u32 %s973_s21, 4  ;;  %s974_s26 = smov 64   ;;  %s33_s22 = int_to_ptr.vmem [resolvable:$true] %s32_s22 }
   0x4   :  { %s975_s27 = smov 4   ;;  %s976_s28 = smov [#allocation2]  }
   0x5   :  { %38 = dma.hbm_to_vmem [thread:$0]  %s31_s20, 256, %s33_s22, [#allocation6], %s974_s26, %s974_s26, %s975_s27  }
   0x6   :  { %s19_s29 = sshll.u32 %s976_s28, 4  ;;  %s977_s30 = smov 128   ;;  %s20_s29 = int_to_ptr.vmem [resolvable:$true] %s19_s29 }
   0x7   :  { %s978_s1 = smov 8   ;;  %s45_s8 = sshll.u32 %s1173_s3, 4  ;;  %s46_s8 = int_to_ptr.hbm [resolvable:$true] %s45_s8 }
   0x8   :  { %25 = dma.hbm_to_vmem [thread:$0]  %s18_s25, 256, %s20_s29, [#allocation3], %s977_s30, %s977_s30, %s978_s1  }
   0x9   :  { %s979_s0 = smov [#allocation7]  }
   0xa   :  { %s47_s9 = sshll.u32 %s979_s0, 4  ;;  %s48_s9 = int_to_ptr.vmem [resolvable:$true] %s47_s9 }
   0xb   :  { %53 = dma.hbm_to_vmem [thread:$0]  %s46_s8, 256, %s48_s9, [#allocation6], %s974_s26, %s974_s26, %s975_s27  }
   0xc   :  { %967 = dma.done.wait [#allocation3], 256  }
   0xd   :  { %968 = vsyncadd [#allocation3], 4294967040 }
   0xe   :  { %969 = dma.done.wait [#allocation6], 512  }
   0xf   :  { %970 = vsyncadd [#allocation6], 4294966784  ;;  %v824_v0 = vld [vmem:[#allocation5 + $0x8] sm:$0xff]  ;;  %v823_v1 = vld [vmem:[#allocation5] sm:$0xff]  ;;  %vm92_vm0 = vcmask 261120   ;;  %s980_s11 = smov 104  }
  0x10   :  { %102 = vmatpush.bf16.msra.mxu0 %v824_v0  ;;  %v69_v2 = vld [vmem:[#allocation2] sm:$0xff]  ;;  %v70_v3 = vld [vmem:[#allocation2 + $0x8] sm:$0xff]  ;;  %s981_s12 = smov 120   ;;  %s982_s13 = smov 112   ;;  %vm143_vm1 = vcmask 64512   ;;  %vm432_vm2 = vcmask 1043456  }
  0x11   :  { %v71_v4 = vpack.c.bf16 %v70_v3, %v69_v2  ;;  %v837_v5 = vld [vmem:[%s1172_s2] ss:$0 sm:$0xff]  ;;  %s983_s2 = smov 96   ;;  %s776_s19 = sshll.u32 %s1175_s5, 4  ;;  %s777_s19 = int_to_ptr.hbm [resolvable:$true] %s776_s19 }
  0x14   :  { %103 = vmatpush.bf16.msra.mxu0 %v823_v1 }
  0x17   :  { %798 = vmatmul.msk.bf16.vlgmr.msra.gmra.mxu0 %vm92_vm0, %v71_v4 }
  0x94   :  { %v105_v6 = vpop.f32.mrf.mxu0 }
  0x95   :  { %v106_v7 = vadd.f32 %v837_v5, %v105_v6 }
  0x97   :  { %124 = vrot.lane.b32.xlu2 %v106_v7, %s980_s11  ;;  %112 = vrot.lane.b32.xlu0 %v106_v7, %s981_s12  ;;  %v1035_v14 = vpack.c.bf16 %v106_v7, %v106_v7 }
  0x99   :  { %v139_v19 = vunpack.c.l.b16 %v1035_v14 }
  0x9b   :  { %v140_v25 = vpack.c.b16 %v139_v19, %v139_v19 }
  0x9c   :  { %v107_v8 = vpop.f32.mrf.mxu0 }
  0x9d   :  { %v108_v9 = vadd.f32 %v837_v5, %v107_v8 }
  0x9f   :  { %114 = vrot.lane.b32.xlu1 %v108_v9, %s981_s12  ;;  %126 = vrot.lane.b32.xlu2 %v108_v9, %s980_s11  ;;  %v1044_v26 = vpack.c.bf16 %v108_v9, %v108_v9 }
  0xa0   :  { %118 = vrot.lane.b32.xlu0 %v106_v7, %s982_s13 }
  0xa1   :  { %v236_v31 = vunpack.c.l.b16 %v1044_v26 }
  0xa3   :  { %v1055_v36 = vpack.c.b16 %v236_v31, %v236_v31 }
  0xa7   :  { %120 = vrot.lane.b32.xlu1 %v108_v9, %s982_s13 }
  0xf1   :  { %v125_v16 = vpop.permute.xlu2 %124 }
  0xf2   :  { %v133_v23 = vpack.c.bf16 %v125_v16, %v125_v16 }
  0xf4   :  { %v212_v29 = vunpack.c.l.b16 %v133_v23 }
  0xf6   :  { %v1051_v34 = vpack.c.b16 %v212_v29, %v212_v29 }
  0xf9   :  { %v127_v32 = vpop.permute.xlu2 %126 }
  0xfa   :  { %v137_v37 = vpack.c.bf16 %v127_v32, %v127_v32 }
  0xfc   :  { %v308_v38 = vunpack.c.l.b16 %v137_v37 }
  0xfe   :  { %v1063_v39 = vpack.c.b16 %v308_v38, %v308_v38 }
 0x109   :  { %v113_v10 = vpop.permute.xlu0 %112 }
 0x10a   :  { %v131_v11 = vpack.c.bf16 %v113_v10, %v113_v10 }
 0x10c   :  { %v164_v12 = vunpack.c.l.b16 %v131_v11 }
 0x10e   :  { %v165_v13 = vpack.c.b16 %v164_v12, %v164_v12 }
 0x110   :  { %166 = vrot.lane.b32.xlu0 %v165_v13, %s983_s2 }
 0x111   :  { %v115_v15 = vpop.permute.xlu1 %114 }
 0x112   :  { %v1038_v17 = vpack.c.bf16 %v115_v15, %v115_v15  ;;  %v119_v18 = vpop.permute.xlu0 %118 }
 0x113   :  { %v132_v20 = vpack.c.bf16 %v119_v18, %v119_v18 }
 0x114   :  { %v260_v21 = vunpack.c.l.b16 %v1038_v17 }
 0x115   :  { %v188_v22 = vunpack.c.l.b16 %v132_v20 }
 0x116   :  { %v1042_v24 = vpack.c.b16 %v260_v21, %v260_v21 }
 0x117   :  { %v189_v27 = vpack.c.b16 %v188_v22, %v188_v22 }
 0x118   :  { %262 = vrot.lane.b32.xlu2 %v1042_v24, %s983_s2  ;;  %141 = vrot.lane.b32.xlu0 %v140_v25, %s983_s2 }
 0x119   :  { %190 = vrot.lane.b32.xlu1 %v189_v27, %s983_s2  ;;  %v121_v28 = vpop.permute.xlu1 %120 }
 0x11a   :  { %v136_v30 = vpack.c.bf16 %v121_v28, %v121_v28 }
 0x11c   :  { %v284_v33 = vunpack.c.l.b16 %v136_v30 }
 0x11e   :  { %v1053_v35 = vpack.c.b16 %v284_v33, %v284_v33 }
 0x120   :  { %214 = vrot.lane.b32.xlu2 %v1051_v34, %s983_s2  ;;  %238 = vrot.lane.b32.xlu0 %v1055_v36, %s983_s2 }
 0x121   :  { %286 = vrot.lane.b32.xlu1 %v1053_v35, %s983_s2 }
 0x128   :  { %449 = vrot.lane.b32.xlu2 %v165_v13, %s974_s26  ;;  %470 = vrot.lane.b32.xlu0 %v189_v27, %s974_s26 }
 0x129   :  { %310 = vrot.lane.b32.xlu1 %v1063_v39, %s983_s2 }
 0x130   :  { %427 = vrot.lane.b32.xlu2 %v140_v25, %s974_s26 }
 0x172   :  { %v263_v40 = vpop.permute.xlu2 %262 }
 0x173   :  { %v268_v45 = vsel %vm143_vm1, %v263_v40, 0 }
 0x17a   :  { %v215_v41 = vpop.permute.xlu2 %214 }
 0x17b   :  { %v220_v42 = vsel %vm143_vm1, %v215_v41, 0 }
 0x17c   :  { %229 = vmatpush.bf16.xpose.msrb.mxu0 %v220_v42 }
 0x182   :  { %v167_v43 = vpop.permute.xlu0 %166  ;;  %v450_v46 = vpop.permute.xlu2 %449 }
 0x183   :  { %802 = vmatmul.msk.bf16.vlgmr.msrb.gmra.mxu0 %vm143_vm1, %v133_v23  ;;  %v172_v44 = vsel %vm143_vm1, %v167_v43, 0  ;;  %v455_v48 = vsel %vm432_vm2, %v450_v46, 0 }
 0x184   :  { %181 = vmatpush.bf16.xpose.msra.mxu2 %v172_v44 }
 0x18a   :  { %v142_v47 = vpop.permute.xlu0 %141  ;;  %v428_v52 = vpop.permute.xlu2 %427 }
 0x18b   :  { %v191_v49 = vpop.permute.xlu1 %190  ;;  %800 = vmatmul.msk.bf16.vlgmr.msra.gmra.mxu2 %vm143_vm1, %v131_v11  ;;  %v148_v50 = vsel %vm143_vm1, %v142_v47, 0  ;;  %v434_v56 = vsel %vm432_vm2, %v428_v52, 0 }
 0x18c   :  { %277 = vmatpush.bf16.xpose.msrb.mxu2 %v268_v45  ;;  %157 = vmatpush.bf16.xpose.msra.mxu1 %v148_v50  ;;  %v196_v51 = vsel %vm143_vm1, %v191_v49, 0 }
 0x18d   :  { %205 = vmatpush.bf16.xpose.msra.mxu3 %v196_v51 }
 0x192   :  { %v239_v53 = vpop.permute.xlu0 %238 }
 0x193   :  { %v287_v54 = vpop.permute.xlu1 %286  ;;  %799 = vmatmul.msk.bf16.vlgmr.msra.gmra.mxu1 %vm143_vm1, %v1035_v14  ;;  %v244_v55 = vsel %vm143_vm1, %v239_v53, 0 }
 0x194   :  { %464 = vmatpush.bf16.msra.mxu2 %v455_v48  ;;  %801 = vmatmul.msk.bf16.vlgmr.msra.gmra.mxu3 %vm143_vm1, %v132_v20  ;;  %v292_v57 = vsel %vm143_vm1, %v287_v54, 0 }
 0x195   :  { %253 = vmatpush.bf16.xpose.msrb.mxu1 %v244_v55  ;;  %301 = vmatpush.bf16.xpose.msrb.mxu3 %v292_v57 }
 0x19a   :  { %v471_v58 = vpop.permute.xlu0 %470 }
 0x19b   :  { %v311_v59 = vpop.permute.xlu1 %310  ;;  %v476_v60 = vsel %vm432_vm2, %v471_v58, 0  ;;  %804 = vmatmul.msk.bf16.vlgmr.msrb.gmra.mxu2 %vm143_vm1, %v1038_v17 }
 0x19c   :  { %v316_v61 = vsel %vm143_vm1, %v311_v59, 0 }
 0x19d   :  { %443 = vmatpush.bf16.msra.mxu1 %v434_v56  ;;  %485 = vmatpush.bf16.msra.mxu3 %v476_v60 }
 0x19e   :  { %325 = vmatpush.bf16.xpose.msra.mxu0 %v316_v61 }
 0x1a3   :  { %803 = vmatmul.msk.bf16.vlgmr.msrb.gmra.mxu1 %vm143_vm1, %v1044_v26 }
 0x1a4   :  { %805 = vmatmul.msk.bf16.vlgmr.msrb.gmra.mxu3 %vm143_vm1, %v136_v30 }
 0x1a5   :  { %806 = vmatmul.msk.bf16.vlgmr.msra.gmra.mxu0 %vm143_vm1, %v137_v37 }
 0x200   :  { %v231_v62 = vpop.f32.mrf.mxu0 }
 0x201   :  { %v340_v63 = vsel %vm143_vm1, %v231_v62, -inf }
 0x202   :  { %341 = vmax.xlane.f32.xlu2 %v340_v63 }
 0x208   :  { %v233_v0 = vpop.f32.mrf.mxu0 }
 0x20e   :  { %v183_v1 = vpop.f32.mrf.mxu2 }
 0x20f   :  { %v334_v2 = vsel %vm143_vm1, %v183_v1, -inf }
 0x210   :  { %335 = vmax.xlane.f32.xlu2 %v334_v2  ;;  %v159_v3 = vpop.f32.mrf.mxu1 }
 0x211   :  { %v331_v4 = vsel %vm143_vm1, %v159_v3, -inf }
 0x212   :  { %332 = vmax.xlane.f32.xlu1 %v331_v4 }
 0x216   :  { %v185_v5 = vpop.f32.mrf.mxu2 }
 0x217   :  { %v207_v6 = vpop.f32.mrf.mxu3 }
 0x218   :  { %v337_v7 = vsel %vm143_vm1, %v207_v6, -inf  ;;  %v161_v8 = vpop.f32.mrf.mxu1 }
 0x219   :  { %338 = vmax.xlane.f32.xlu0 %v337_v7 }
 0x21e   :  { %v279_v9 = vpop.f32.mrf.mxu2 }
 0x21f   :  { %v209_v10 = vpop.f32.mrf.mxu3  ;;  %v346_v20 = vsel %vm143_vm1, %v279_v9, -inf }
 0x220   :  { %v255_v11 = vpop.f32.mrf.mxu1 }
 0x221   :  { %v343_v13 = vsel %vm143_vm1, %v255_v11, -inf }
 0x222   :  { %v1096_v12 = vpop.f32.mrf.mxu0  ;;  %344 = vmax.xlane.f32.xlu1 %v343_v13 }
 0x223   :  { %v352_v14 = vsel %vm143_vm1, %v1096_v12, -inf }
 0x224   :  { %353 = vmax.xlane.f32.xlu2 %v352_v14 }
 0x226   :  { %v281_v15 = vpop.f32.mrf.mxu2 }
 0x227   :  { %v303_v16 = vpop.f32.mrf.mxu3 }
 0x228   :  { %v349_v17 = vsel %vm143_vm1, %v303_v16, -inf  ;;  %v257_v18 = vpop.f32.mrf.mxu1 }
 0x229   :  { %350 = vmax.xlane.f32.xlu0 %v349_v17 }
 0x22a   :  { %v329_v19 = vpop.f32.mrf.mxu0 }
 0x22c   :  { %347 = vmax.xlane.f32.xlu2 %v346_v20 }
 0x22f   :  { %v305_v21 = vpop.f32.mrf.mxu3 }
 0x244   :  { %533 = vrot.lane.b32.xlu2 %v1042_v24, %s974_s26 }
 0x24c   :  { %554 = vrot.lane.b32.xlu2 %v1053_v35, %s974_s26 }
 0x275   :  { %v342_v22 = vpop.xlane.xlu2 %341 }
 0x276   :  { %v358_v29 = vsub.f32 %v231_v62, %v342_v22 }
 0x278   :  { %v369_v31 = vmul.f32 1.442695, %v358_v29 }
 0x283   :  { %v336_v23 = vpop.xlane.xlu2 %335 }
 0x284   :  { %v356_v25 = vsub.f32 %v183_v1, %v336_v23 }
 0x285   :  { %v333_v26 = vpop.xlane.xlu1 %332 }
 0x286   :  { %v365_v27 = vmul.f32 1.442695, %v356_v25  ;;  %v355_v28 = vsub.f32 %v159_v3, %v333_v26 }
 0x288   :  { %839 = vpow2.f32 %v365_v27  ;;  %v363_v30 = vmul.f32 1.442695, %v355_v28 }
 0x28a   :  { %841 = vpow2.f32 %v363_v30 }
 0x28b   :  { %843 = vpow2.f32 %v369_v31 }
 0x28c   :  { %v339_v32 = vpop.xlane.xlu0 %338 }
 0x28d   :  { %v357_v24 = vsub.f32 %v207_v6, %v339_v32 }
 0x28e   :  { %v840_v33 = vpop.eup %839 }
 0x28f   :  { %v382_v37 = vsel %vm143_vm1, %v840_v33, 0.0  ;;  %v367_v40 = vmul.f32 1.442695, %v357_v24 }
 0x290   :  { %v842_v38 = vpop.eup %841  ;;  %383 = vadd.xlane.f32.xlu0 %v382_v37 }
 0x291   :  { %v379_v35 = vsel %vm143_vm1, %v842_v38, 0.0  ;;  %v1109_v42 = vpop.eup %843  ;;  %845 = vpow2.f32 %v367_v40 }
 0x292   :  { %380 = vadd.xlane.f32.xlu1 %v379_v35  ;;  %v388_v46 = vsel %vm143_vm1, %v1109_v42, 0.0 }
 0x295   :  { %v345_v41 = vpop.xlane.xlu1 %344 }
 0x296   :  { %v359_v44 = vsub.f32 %v255_v11, %v345_v41 }
 0x297   :  { %v354_v43 = vpop.xlane.xlu2 %353  ;;  %v846_v47 = vpop.eup %845 }
 0x298   :  { %v371_v45 = vmul.f32 1.442695, %v359_v44  ;;  %v385_v53 = vsel %vm143_vm1, %v846_v47, 0.0  ;;  %v362_v0 = vsub.f32 %v1096_v12, %v354_v43  ;;  %v596_v43 = vld [vmem:[#allocation7] sm:$0xf] }
 0x299   :  { %v612_v44 = vsel %vm432_vm2, %v596_v43, 0 }
 0x29a   :  { %847 = vpow2.f32 %v371_v45  ;;  %389 = vadd.xlane.f32.xlu1 %v388_v46  ;;  %v377_v1 = vmul.f32 1.442695, %v362_v0  ;;  %v597_v45 = vld [vmem:[#allocation7 + $0x4] sm:$0xf] }
 0x29b   :  { %v631_v46 = vsel %vm432_vm2, %v597_v45, 0 }
 0x29c   :  { %v351_v60 = vpop.xlane.xlu0 %350 }
 0x29d   :  { %v361_v61 = vsub.f32 %v303_v16, %v351_v60 }
 0x29f   :  { %v348_v48 = vpop.xlane.xlu2 %347  ;;  %v375_v62 = vmul.f32 1.442695, %v361_v61 }
 0x2a0   :  { %v360_v49 = vsub.f32 %v279_v9, %v348_v48  ;;  %v848_v50 = vpop.eup %847 }
 0x2a1   :  { %v391_v52 = vsel %vm143_vm1, %v848_v50, 0.0 }
 0x2a2   :  { %v373_v51 = vmul.f32 1.442695, %v360_v49  ;;  %392 = vadd.xlane.f32.xlu2 %v391_v52  ;;  %386 = vadd.xlane.f32.xlu1 %v385_v53 }
 0x2a4   :  { %849 = vpow2.f32 %v373_v51  ;;  %512 = vrot.lane.b32.xlu0 %v1055_v36, %s974_s26 }
 0x2a5   :  { %851 = vpow2.f32 %v375_v62 }
 0x2a6   :  { %853 = vpow2.f32 %v377_v1 }
 0x2a7   :  { %v534_v54 = vpop.permute.xlu2 %533 }
 0x2a8   :  { %v539_v55 = vsel %vm432_vm2, %v534_v54, 0  ;;  %v599_v54 = vld [vmem:[#allocation7 + $0xc] sm:$0xf] }
 0x2a9   :  { %548 = vmatpush.bf16.msrb.mxu2 %v539_v55  ;;  %v669_v55 = vsel %vm432_vm2, %v599_v54, 0 }
 0x2aa   :  { %v850_v56 = vpop.eup %849 }
 0x2ab   :  { %v394_v57 = vsel %vm143_vm1, %v850_v56, 0.0  ;;  %v852_v36 = vpop.eup %851 }
 0x2ac   :  { %395 = vadd.xlane.f32.xlu1 %v394_v57  ;;  %v397_v63 = vsel %vm143_vm1, %v852_v36, 0.0  ;;  %v854_v2 = vpop.eup %853 }
 0x2ad   :  { %v400_v3 = vsel %vm143_vm1, %v854_v2, 0.0 }
 0x2af   :  { %v555_v58 = vpop.permute.xlu2 %554 }
 0x2b0   :  { %v560_v59 = vsel %vm432_vm2, %v555_v58, 0 }
 0x2b1   :  { %569 = vmatpush.bf16.msrb.mxu3 %v560_v59 }
 0x2c5   :  { %491 = vrot.lane.b32.xlu1 %v1051_v34, %s974_s26 }
 0x2ce   :  { %398 = vadd.xlane.f32.xlu0 %v397_v63 }
 0x2e2   :  { %575 = vrot.lane.b32.xlu0 %v1063_v39, %s974_s26 }
 0x2ef   :  { %401 = vadd.xlane.f32.xlu1 %v400_v3 }
 0x303   :  { %v384_v4 = vpop.xlane.xlu0 %383 }
 0x304   :  { %855 = vrcp.f32 %v384_v4 }
 0x305   :  { %v381_v5 = vpop.xlane.xlu1 %380 }
 0x306   :  { %857 = vrcp.f32 %v381_v5 }
 0x30a   :  { %v856_v34 = vpop.eup %855 }
 0x30b   :  { %v412_v6 = vmul.f32 %v856_v34, %v840_v33 }
 0x30c   :  { %v858_v7 = vpop.eup %857 }
 0x30d   :  { %v420_v8 = vpack.c.bf16 %v412_v6, %v412_v6  ;;  %v411_v9 = vmul.f32 %v858_v7, %v842_v38  ;;  %v390_v10 = vpop.xlane.xlu1 %389 }
 0x30f   :  { %v419_v11 = vpack.c.bf16 %v411_v9, %v411_v9  ;;  %808 = vmatmul.msk.bf16.vlgmr.msra.gmra.mxu2 %vm143_vm1, %v420_v8 }
 0x310   :  { %640 = vmatpush.bf16.msra.mxu2 %v631_v46 }
 0x311   :  { %807 = vmatmul.msk.bf16.vlgmr.msra.gmra.mxu1 %vm143_vm1, %v419_v11 }
 0x315   :  { %v393_v39 = vpop.xlane.xlu2 %392  ;;  %v387_v12 = vpop.xlane.xlu1 %386 }
 0x316   :  { %859 = vrcp.f32 %v393_v39  ;;  %v513_v13 = vpop.permute.xlu0 %512 }
 0x317   :  { %861 = vrcp.f32 %v387_v12  ;;  %v518_v14 = vsel %vm432_vm2, %v513_v13, 0 }
 0x318   :  { %527 = vmatpush.bf16.msrb.mxu1 %v518_v14 }
 0x31c   :  { %v860_v15 = vpop.eup %859  ;;  %621 = vmatpush.bf16.msra.mxu1 %v612_v44 }
 0x31d   :  { %v862_v16 = vpop.eup %861  ;;  %v415_v17 = vmul.f32 %v860_v15, %v848_v50 }
 0x31e   :  { %v413_v18 = vmul.f32 %v862_v16, %v846_v47  ;;  %v598_v47 = vld [vmem:[#allocation7 + $0x8] sm:$0xf] }
 0x31f   :  { %v396_v19 = vpop.xlane.xlu1 %395  ;;  %v423_v20 = vpack.c.bf16 %v415_v17, %v415_v17  ;;  %v650_v48 = vsel %vm432_vm2, %v598_v47, 0 }
 0x320   :  { %863 = vrcp.f32 %v396_v19  ;;  %v421_v21 = vpack.c.bf16 %v413_v18, %v413_v18 }
 0x321   :  { %811 = vmatmul.msk.bf16.vlgmr.msrb.gmra.mxu1 %vm143_vm1, %v423_v20  ;;  %865 = vrcp.f32 %v390_v10 }
 0x322   :  { %809 = vmatmul.msk.bf16.vlgmr.msra.gmra.mxu3 %vm143_vm1, %v421_v21  ;;  %694 = vmatpush.bf16.msrb.mxu1 %v612_v44 }
 0x323   :  { %659 = vmatpush.bf16.msra.mxu3 %v650_v48 }
 0x326   :  { %v864_v22 = vpop.eup %863 }
 0x327   :  { %v416_v23 = vmul.f32 %v864_v22, %v850_v56  ;;  %v866_v26 = vpop.eup %865 }
 0x328   :  { %v414_v27 = vmul.f32 %v866_v26, %v1109_v42 }
 0x329   :  { %v424_v25 = vpack.c.bf16 %v416_v23, %v416_v23  ;;  %v838_v23 = vld [vmem:[%s1174_s4] ss:$0 sm:$0xff]  ;;  %s984_s4 = smov [#allocation8]  }
 0x32a   :  { %v422_v30 = vpack.c.bf16 %v414_v27, %v414_v27  ;;  %s774_s16 = sshll.u32 %s984_s4, 4  ;;  %s775_s16 = int_to_ptr.vmem [resolvable:$true] %s774_s16 }
 0x32b   :  { %812 = vmatmul.msk.bf16.vlgmr.msrb.gmra.mxu2 %vm143_vm1, %v424_v25 }
 0x32c   :  { %710 = vmatpush.bf16.msrb.mxu2 %v631_v46 }
 0x337   :  { %v492_v28 = vpop.permute.xlu1 %491 }
 0x338   :  { %v497_v29 = vsel %vm432_vm2, %v492_v28, 0 }
 0x339   :  { %506 = vmatpush.bf16.msrb.mxu0 %v497_v29 }
 0x33c   :  { %810 = vmatmul.msk.bf16.vlgmr.msrb.gmra.mxu0 %vm143_vm1, %v422_v30 }
 0x341   :  { %v399_v31 = vpop.xlane.xlu0 %398 }
 0x342   :  { %867 = vrcp.f32 %v399_v31 }
 0x348   :  { %v868_v32 = vpop.eup %867 }
 0x349   :  { %v417_v33 = vmul.f32 %v868_v32, %v852_v36 }
 0x34b   :  { %v425_v37 = vpack.c.bf16 %v417_v33, %v417_v33 }
 0x34d   :  { %813 = vmatmul.msk.bf16.vlgmr.msrb.gmra.mxu3 %vm143_vm1, %v425_v37 }
 0x34e   :  { %726 = vmatpush.bf16.msrb.mxu3 %v650_v48 }
 0x354   :  { %v576_v38 = vpop.permute.xlu0 %575 }
 0x355   :  { %v581_v24 = vsel %vm432_vm2, %v576_v38, 0 }
 0x356   :  { %590 = vmatpush.bf16.msra.mxu0 %v581_v24 }
 0x35a   :  { %678 = vmatpush.bf16.msrb.mxu0 %v669_v55 }
 0x362   :  { %v402_v35 = vpop.xlane.xlu1 %401 }
 0x363   :  { %869 = vrcp.f32 %v402_v35 }
 0x369   :  { %v870_v40 = vpop.eup %869 }
 0x36a   :  { %v418_v41 = vmul.f32 %v870_v40, %v854_v2 }
 0x36c   :  { %v426_v42 = vpack.c.bf16 %v418_v41, %v418_v41 }
 0x36e   :  { %814 = vmatmul.msk.bf16.vlgmr.msra.gmra.mxu0 %vm143_vm1, %v426_v42 }
 0x36f   :  { %742 = vmatpush.bf16.msra.mxu0 %v669_v55 }
 0x38e   :  { %v445_v49 = vpop.f32.mrf.mxu1 }
 0x38f   :  { %v600_v50 = vpack.c.bf16 %v445_v49, %v445_v49 }
 0x391   :  { %815 = vmatmul.msk.bf16.vlgmr.msra.gmra.mxu1 %vm143_vm1, %v600_v50 }
 0x392   :  { %v466_v51 = vpop.f32.mrf.mxu2 }
 0x393   :  { %v601_v52 = vpack.c.bf16 %v466_v51, %v466_v51 }
 0x395   :  { %816 = vmatmul.msk.bf16.vlgmr.msra.gmra.mxu2 %vm143_vm1, %v601_v52 }
 0x396   :  { %v447_v53 = vpop.f32.mrf.mxu1 }
 0x39a   :  { %v468_v56 = vpop.f32.mrf.mxu2 }
 0x39e   :  { %v529_v57 = vpop.f32.mrf.mxu1 }
 0x39f   :  { %v604_v58 = vpack.c.bf16 %v529_v57, %v529_v57 }
 0x3a1   :  { %819 = vmatmul.msk.bf16.vlgmr.msrb.gmra.mxu1 %vm143_vm1, %v604_v58 }
 0x3a5   :  { %v487_v59 = vpop.f32.mrf.mxu3 }
 0x3a6   :  { %v602_v60 = vpack.c.bf16 %v487_v59, %v487_v59  ;;  %v531_v61 = vpop.f32.mrf.mxu1 }
 0x3a8   :  { %817 = vmatmul.msk.bf16.vlgmr.msra.gmra.mxu3 %vm143_vm1, %v602_v60 }
 0x3ad   :  { %v489_v62 = vpop.f32.mrf.mxu3 }
 0x3ae   :  { %v550_v36 = vpop.f32.mrf.mxu2 }
 0x3af   :  { %v605_v63 = vpack.c.bf16 %v550_v36, %v550_v36 }
 0x3b1   :  { %820 = vmatmul.msk.bf16.vlgmr.msrb.gmra.mxu2 %vm143_vm1, %v605_v63 }
 0x3b6   :  { %v552_v0 = vpop.f32.mrf.mxu2 }
 0x3b9   :  { %v508_v1 = vpop.f32.mrf.mxu0 }
 0x3ba   :  { %v603_v2 = vpack.c.bf16 %v508_v1, %v508_v1 }
 0x3bc   :  { %818 = vmatmul.msk.bf16.vlgmr.msrb.gmra.mxu0 %vm143_vm1, %v603_v2 }
 0x3c1   :  { %v510_v3 = vpop.f32.mrf.mxu0 }
 0x3d0   :  { %v571_v4 = vpop.f32.mrf.mxu3 }
 0x3d1   :  { %v606_v5 = vpack.c.bf16 %v571_v4, %v571_v4 }
 0x3d3   :  { %821 = vmatmul.msk.bf16.vlgmr.msrb.gmra.mxu3 %vm143_vm1, %v606_v5 }
 0x3d8   :  { %v573_v34 = vpop.f32.mrf.mxu3 }
 0x3eb   :  { %v592_v6 = vpop.f32.mrf.mxu0 }
 0x3ec   :  { %v607_v7 = vpack.c.bf16 %v592_v6, %v592_v6 }
 0x3ee   :  { %822 = vmatmul.msk.bf16.vlgmr.msra.gmra.mxu0 %vm143_vm1, %v607_v7 }
 0x3f3   :  { %v594_v8 = vpop.f32.mrf.mxu0 }
 0x40e   :  { %v623_v9 = vpop.f32.mrf.mxu1 }
 0x40f   :  { %v748_v18 = vsel %vm92_vm0, %v623_v9, 0.0 }
 0x416   :  { %v625_v10 = vpop.f32.mrf.mxu1 }
 0x418   :  { %v642_v11 = vpop.f32.mrf.mxu2 }
 0x419   :  { %v749_v15 = vsel %vm92_vm0, %v642_v11, 0.0 }
 0x41a   :  { %v750_v20 = vadd.f32 %v749_v15, %v748_v18 }
 0x41e   :  { %v696_v39 = vpop.f32.mrf.mxu1 }
 0x41f   :  { %v755_v33 = vsel %vm92_vm0, %v696_v39, 0.0 }
 0x420   :  { %v644_v12 = vpop.f32.mrf.mxu2 }
 0x426   :  { %v698_v13 = vpop.f32.mrf.mxu1 }
 0x42b   :  { %v661_v14 = vpop.f32.mrf.mxu3 }
 0x42c   :  { %v751_v19 = vsel %vm92_vm0, %v661_v14, 0.0 }
 0x42d   :  { %v752_v21 = vadd.f32 %v751_v19, %v750_v20 }
 0x433   :  { %v663_v16 = vpop.f32.mrf.mxu3 }
 0x434   :  { %v712_v17 = vpop.f32.mrf.mxu2 }
 0x435   :  { %v756_v32 = vsel %vm92_vm0, %v712_v17, 0.0 }
 0x436   :  { %v757_v38 = vadd.f32 %v756_v32, %v755_v33 }
 0x439   :  { %v680_v22 = vpop.f32.mrf.mxu0 }
 0x43a   :  { %v753_v25 = vsel %vm92_vm0, %v680_v22, 0.0 }
 0x43b   :  { %v754_v26 = vadd.f32 %v753_v25, %v752_v21 }
 0x43c   :  { %v714_v27 = vpop.f32.mrf.mxu2 }
 0x43d   :  { %v766_v28 = vadd.f32 %v838_v23, %v754_v26 }
 0x43f   :  { %768 = vst.msk [vmem:[#allocation8] sm:$0xff] %vm92_vm0, %v766_v28 }
 0x441   :  { %v682_v29 = vpop.f32.mrf.mxu0 }
 0x456   :  { %v728_v30 = vpop.f32.mrf.mxu3 }
 0x457   :  { %v758_v37 = vsel %vm92_vm0, %v728_v30, 0.0 }
 0x458   :  { %v759_v24 = vadd.f32 %v758_v37, %v757_v38 }
 0x45e   :  { %v730_v31 = vpop.f32.mrf.mxu3 }
 0x46b   :  { %v744_v35 = vpop.f32.mrf.mxu0 }
 0x46c   :  { %v760_v40 = vsel %vm92_vm0, %v744_v35, 0.0 }
 0x46d   :  { %v761_v41 = vadd.f32 %v760_v40, %v759_v24 }
 0x46f   :  { %v767_v42 = vadd.f32 %v838_v23, %v761_v41 }
 0x471   :  { %769 = vst.msk [vmem:[#allocation8 + $0x8] sm:$0xff] %vm92_vm0, %v767_v42 }
 0x472   :  { %782 = dma.vmem_to_hbm [thread:$0]  %s775_s16, 256, %s777_s19, [#allocation4], %s977_s30, %s977_s30, %s978_s1  }
 0x473   :  { %v746_v43 = vpop.f32.mrf.mxu0 }
 0x474   :  { %971 = dma.done.wait [#allocation4], 256  }
 0x475   :  { %972 = vsyncadd [#allocation4], 4294967040 }
 0x476   :  { %787 = vsyncpa [#allocation3], 1 }
 0x477   :  { %788 = vsyncpa [#allocation6], 1 }
 0x478   :  { %789 = vsyncpa [#allocation4], 1 }

</bundles_post_ra>
